<compile_context>
chip_gen: v6e
topology: v6e:2x2x1
jax: 0.10.0
libtpu: 0.0.40
codegen_flags: <defaults>
</compile_context>

<pallas_src>
import functools
import math

import jax
import jax.numpy as jnp
from jax.experimental import pallas as pl
from jax.experimental.pallas import tpu as pltpu


LANE = 128            # feature dims padded to a multiple of the lane width
SUBLANE = 8           # f32 sublane tile (activations stay f32 in VMEM)
BATCH_TILE = 256      # batch tile for the gridded (multi-TensorCore) path
_VMEM_WEIGHT_BUDGET = 24 * 1024 * 1024  # headroom under v7x's 32 MiB scoped VMEM default


def _round_up(x: int, m: int) -> int:
    return -(-x // m) * m


def _fused_mlp_kernel(x_ref, w_ref, b_ref, o_ref, *, num_layers_total: int):
    """Fused MLP: (Linear -> ReLU) x (L-1) -> Linear, all in VMEM/vregs.

    x_ref: [TB, P]   f32 padded input activations
    w_ref: [L, P, P] bf16 zero-padded weights (in x out)
    b_ref: [L, 1, P] f32  zero-padded biases
    o_ref: [TB, P]   f32 padded logits
    """
    h = x_ref[...]                                    # f32 activations
    # L is small and static -> unrolled Python loop; activations never leave vregs.
    for i in range(num_layers_total):
        w = w_ref[i]                                  # bf16 [P, P], static VMEM slice
        b = b_ref[i]                                  # f32  [1, P]
        # bf16 operands into the MXU, f32 accumulation + f32 bias/ReLU epilogue.
        h = jnp.dot(h.astype(jnp.bfloat16), w, preferred_element_type=jnp.float32) + b
        if i < num_layers_total - 1:
            h = jnp.maximum(h, 0.0)
    o_ref[...] = h.astype(o_ref.dtype)


def _pack_params(params, pad_width: int):
    """Stack per-layer (W [in,out], b [1,out]) into zero-padded bf16 [L,P,P] / f32 [L,1,P]."""
    num_layers = len(params)
    w_all = jnp.zeros((num_layers, pad_width, pad_width), jnp.bfloat16)
    b_all = jnp.zeros((num_layers, 1, pad_width), jnp.float32)
    for i, (w, b) in enumerate(params):
        w_all = w_all.at[i, : w.shape[0], : w.shape[1]].set(w.astype(jnp.bfloat16))
        b_all = b_all.at[i, :, : b.shape[1]].set(b.astype(jnp.float32))
    return w_all, b_all


def make_fcnn_forward(params, input_size: int):
    """Pack/pad/cast parameters ONCE, return a jitted forward closing over them."""
    dims = [input_size] + [w.shape[1] for w, _ in params]
    num_classes = dims[-1]
    num_layers_total = len(params)
    pad_width = _round_up(max(dims), LANE)

    # --- done once, cached for every call ---
    w_all, b_all = _pack_params(params, pad_width)
    w_all = jax.device_put(w_all)
    b_all = jax.device_put(b_all)

    param_bytes = w_all.size * w_all.dtype.itemsize + b_all.size * b_all.dtype.itemsize
    # TODO(synk): beyond this budget, switch to a layer grid axis ("arbitrary") with a
    # (1, P, P) weight BlockSpec so only one (double-buffered) layer slab is VMEM-resident,
    # and raise vmem_limit_bytes via pltpu.CompilerParams. Irrelevant at these sizes.
    assert param_bytes <= _VMEM_WEIGHT_BUDGET, "all-weights-resident design exceeds VMEM budget"

    kernel = functools.partial(_fused_mlp_kernel, num_layers_total=num_layers_total)
    vmem = pltpu.MemorySpace.VMEM

    @jax.jit
    def forward(x):
        batch, d_in = x.shape

        if batch <= BATCH_TILE:
            # Whole problem is a few hundred KiB: gridless, full-array VMEM blocks.
            pad_batch = _round_up(max(batch, SUBLANE), SUBLANE)
            call_kwargs = dict(
                in_specs=[
                    pl.BlockSpec(memory_space=vmem),  # x_pad
                    pl.BlockSpec(memory_space=vmem),  # stacked W (bf16)
                    pl.BlockSpec(memory_space=vmem),  # stacked b
                ],
                out_specs=pl.BlockSpec(memory_space=vmem),
                compiler_params=None,
            )
        else:
            # Batch-tiled grid: "parallel" axis shards across TensorCores (v7x) and
            # double-buffers activation DMA; weights stay pinned (constant block index).
            pad_batch = _round_up(batch, BATCH_TILE)
            call_kwargs = dict(
                grid=(pad_batch // BATCH_TILE,),
                in_specs=[
                    pl.BlockSpec((BATCH_TILE, pad_width), lambda i: (i, 0)),
                    pl.BlockSpec((num_layers_total, pad_width, pad_width),
                                 lambda i: (0, 0, 0)),
                    pl.BlockSpec((num_layers_total, 1, pad_width),
                                 lambda i: (0, 0, 0)),
                ],
                out_specs=pl.BlockSpec((BATCH_TILE, pad_width), lambda i: (i, 0)),
                compiler_params=pltpu.CompilerParams(
                    dimension_semantics=("parallel",)),
            )

        # Padding fuses inside the jitted graph (not eager per-call ops).
        x_pad = (jnp.zeros((pad_batch, pad_width), jnp.float32)
                 .at[:batch, :d_in].set(x.astype(jnp.float32)))

        out_pad = pl.pallas_call(
            kernel,
            out_shape=jax.ShapeDtypeStruct((pad_batch, pad_width), jnp.float32),
            **call_kwargs,
        )(x_pad, w_all, b_all)

        return out_pad[:batch, :num_classes]

    return forward


def init_params(key, input_size, hidden_size, num_layers, num_classes):
    """Deterministic init mimicking nn.Linear's U(-1/sqrt(fan_in), 1/sqrt(fan_in)).

    Returns a list of (W [in,out], b [1,out]) tuples:
      layer 0:                input_size  -> hidden_size
      layers 1..num_layers-1: hidden_size -> hidden_size
      last layer:             hidden_size -> num_classes
    """
    dims = [input_size] + [hidden_size] * num_layers + [num_classes]
    params = []
    for i in range(len(dims) - 1):
        fan_in, fan_out = dims[i], dims[i + 1]
        key, kw, kb = jax.random.split(key, 3)
        bound = 1.0 / math.sqrt(fan_in)
        w = jax.random.uniform(kw, (fan_in, fan_out), jnp.float32, -bound, bound)
        b = jax.random.uniform(kb, (1, fan_out), jnp.float32, -bound, bound)
        params.append((w, b))
    return params


def _ref_bf16(x, params):
    """Pure-JAX reference mimicking the kernel numerics (bf16 operands, f32 accum)."""
    h = x
    for i, (w, b) in enumerate(params):
        h = jnp.dot(h.astype(jnp.bfloat16), w.astype(jnp.bfloat16),
                    preferred_element_type=jnp.float32) + b
        if i < len(params) - 1:
            h = jnp.maximum(h, 0.0)
    return h


if __name__ == "__main__":
    # Small shapes consistent with the module's forward (x: [batch, input_size]).
    batch = 8
    input_size = 16
    hidden_size = 32
    num_layers = 3      # -> 1 input layer + 2 hidden layers + 1 output layer
    num_classes = 10

    key = jax.random.PRNGKey(0)
    key, kx = jax.random.split(key)
    x = jax.random.normal(kx, (batch, input_size), jnp.float32)
    params = init_params(key, input_size, hidden_size, num_layers, num_classes)

    forward = make_fcnn_forward(params, input_size)   # packing/padding happens once here

    out = jax.block_until_ready(forward(x))
    assert out.shape == (batch, num_classes)

    # Check against a reference with identical bf16-weight / f32-accumulate numerics.
    ref = _ref_bf16(x, params)
    assert jnp.allclose(out, ref, atol=2e-3, rtol=2e-3)

    # Sanity check against the pure-f32 module semantics (loose tol for bf16 weights).
    ref_f32 = x
    for w, b in params[:-1]:
        ref_f32 = jnp.maximum(ref_f32 @ w + b, 0.0)
    ref_f32 = ref_f32 @ params[-1][0] + params[-1][1]
    assert jnp.allclose(out, ref_f32, atol=5e-2, rtol=5e-2)

    # Exercise the batch-tiled "parallel"-grid path (the v7x multi-TensorCore path).
    key, kx2 = jax.random.split(key)
    x_big = jax.random.normal(kx2, (512, input_size), jnp.float32)
    out_big = jax.block_until_ready(forward(x_big))
    assert out_big.shape == (512, num_classes)
    assert jnp.allclose(out_big, _ref_bf16(x_big, params), atol=2e-3, rtol=2e-3)

    print("KERNEL_OK")
</pallas_src>

<mosaic_0001>
module attributes {stable_mosaic.version = 11 : i64} {
  func.func @_fused_mlp_kernel(%arg0: memref<8x128xf32, #tpu.memory_space<vmem>>, %arg1: memref<4x128x128xbf16, #tpu.memory_space<vmem>>, %arg2: memref<4x1x128xf32, #tpu.memory_space<vmem>>, %arg3: memref<8x128xf32, #tpu.memory_space<vmem>>) attributes {dimension_semantics = [], scalar_prefetch = 0 : i64, scratch_operands = 0 : i64, tpu.core_type = #tpu.core_type<tc>} {
    %c0 = arith.constant 0 : index
    %c0_0 = arith.constant 0 : index
    %0 = vector.load %arg0[%c0, %c0_0] : memref<8x128xf32, #tpu.memory_space<vmem>>, vector<8x128xf32>
    %c0_1 = arith.constant 0 : index
    %c0_2 = arith.constant 0 : index
    %c0_3 = arith.constant 0 : index
    %1 = vector.load %arg1[%c0_1, %c0_2, %c0_3] : memref<4x128x128xbf16, #tpu.memory_space<vmem>>, vector<1x128x128xbf16>
    %2 = vector.shape_cast %1 : vector<1x128x128xbf16> to vector<128x128xbf16>
    %c0_4 = arith.constant 0 : index
    %c0_5 = arith.constant 0 : index
    %c0_6 = arith.constant 0 : index
    %3 = vector.load %arg2[%c0_4, %c0_5, %c0_6] : memref<4x1x128xf32, #tpu.memory_space<vmem>>, vector<1x1x128xf32>
    %4 = vector.shape_cast %3 : vector<1x1x128xf32> to vector<1x128xf32>
    %5 = arith.truncf %0 : vector<8x128xf32> to vector<8x128xbf16>
    %cst = arith.constant dense<0.000000e+00> : vector<8x128xf32>
    %6 = tpu.matmul %5, %2, %cst {dimension_numbers = #tpu.dot_dimension_numbers<[1], [0], [0], [1], [0, 0, 1, 1], [], []>} : vector<8x128xbf16>, vector<128x128xbf16>, vector<8x128xf32> -> vector<8x128xf32>
    %7 = vector.broadcast %4 : vector<1x128xf32> to vector<8x128xf32>
    %8 = arith.addf %6, %7 : vector<8x128xf32>
    %cst_7 = arith.constant 0.000000e+00 : f32
    %9 = vector.broadcast %cst_7 : f32 to vector<8x128xf32>
    %10 = arith.maximumf %8, %9 : vector<8x128xf32>
    %c1 = arith.constant 1 : index
    %c0_8 = arith.constant 0 : index
    %c0_9 = arith.constant 0 : index
    %11 = vector.load %arg1[%c1, %c0_8, %c0_9] : memref<4x128x128xbf16, #tpu.memory_space<vmem>>, vector<1x128x128xbf16>
    %12 = vector.shape_cast %11 : vector<1x128x128xbf16> to vector<128x128xbf16>
    %c1_10 = arith.constant 1 : index
    %c0_11 = arith.constant 0 : index
    %c0_12 = arith.constant 0 : index
    %13 = vector.load %arg2[%c1_10, %c0_11, %c0_12] : memref<4x1x128xf32, #tpu.memory_space<vmem>>, vector<1x1x128xf32>
    %14 = vector.shape_cast %13 : vector<1x1x128xf32> to vector<1x128xf32>
    %15 = arith.truncf %10 : vector<8x128xf32> to vector<8x128xbf16>
    %cst_13 = arith.constant dense<0.000000e+00> : vector<8x128xf32>
    %16 = tpu.matmul %15, %12, %cst_13 {dimension_numbers = #tpu.dot_dimension_numbers<[1], [0], [0], [1], [0, 0, 1, 1], [], []>} : vector<8x128xbf16>, vector<128x128xbf16>, vector<8x128xf32> -> vector<8x128xf32>
    %17 = vector.broadcast %14 : vector<1x128xf32> to vector<8x128xf32>
    %18 = arith.addf %16, %17 : vector<8x128xf32>
    %cst_14 = arith.constant 0.000000e+00 : f32
    %19 = vector.broadcast %cst_14 : f32 to vector<8x128xf32>
    %20 = arith.maximumf %18, %19 : vector<8x128xf32>
    %c2 = arith.constant 2 : index
    %c0_15 = arith.constant 0 : index
    %c0_16 = arith.constant 0 : index
    %21 = vector.load %arg1[%c2, %c0_15, %c0_16] : memref<4x128x128xbf16, #tpu.memory_space<vmem>>, vector<1x128x128xbf16>
    %22 = vector.shape_cast %21 : vector<1x128x128xbf16> to vector<128x128xbf16>
    %c2_17 = arith.constant 2 : index
    %c0_18 = arith.constant 0 : index
    %c0_19 = arith.constant 0 : index
    %23 = vector.load %arg2[%c2_17, %c0_18, %c0_19] : memref<4x1x128xf32, #tpu.memory_space<vmem>>, vector<1x1x128xf32>
    %24 = vector.shape_cast %23 : vector<1x1x128xf32> to vector<1x128xf32>
    %25 = arith.truncf %20 : vector<8x128xf32> to vector<8x128xbf16>
    %cst_20 = arith.constant dense<0.000000e+00> : vector<8x128xf32>
    %26 = tpu.matmul %25, %22, %cst_20 {dimension_numbers = #tpu.dot_dimension_numbers<[1], [0], [0], [1], [0, 0, 1, 1], [], []>} : vector<8x128xbf16>, vector<128x128xbf16>, vector<8x128xf32> -> vector<8x128xf32>
    %27 = vector.broadcast %24 : vector<1x128xf32> to vector<8x128xf32>
    %28 = arith.addf %26, %27 : vector<8x128xf32>
    %cst_21 = arith.constant 0.000000e+00 : f32
    %29 = vector.broadcast %cst_21 : f32 to vector<8x128xf32>
    %30 = arith.maximumf %28, %29 : vector<8x128xf32>
    %c3 = arith.constant 3 : index
    %c0_22 = arith.constant 0 : index
    %c0_23 = arith.constant 0 : index
    %31 = vector.load %arg1[%c3, %c0_22, %c0_23] : memref<4x128x128xbf16, #tpu.memory_space<vmem>>, vector<1x128x128xbf16>
    %32 = vector.shape_cast %31 : vector<1x128x128xbf16> to vector<128x128xbf16>
    %c3_24 = arith.constant 3 : index
    %c0_25 = arith.constant 0 : index
    %c0_26 = arith.constant 0 : index
    %33 = vector.load %arg2[%c3_24, %c0_25, %c0_26] : memref<4x1x128xf32, #tpu.memory_space<vmem>>, vector<1x1x128xf32>
    %34 = vector.shape_cast %33 : vector<1x1x128xf32> to vector<1x128xf32>
    %35 = arith.truncf %30 : vector<8x128xf32> to vector<8x128xbf16>
    %cst_27 = arith.constant dense<0.000000e+00> : vector<8x128xf32>
    %36 = tpu.matmul %35, %32, %cst_27 {dimension_numbers = #tpu.dot_dimension_numbers<[1], [0], [0], [1], [0, 0, 1, 1], [], []>} : vector<8x128xbf16>, vector<128x128xbf16>, vector<8x128xf32> -> vector<8x128xf32>
    %37 = vector.broadcast %34 : vector<1x128xf32> to vector<8x128xf32>
    %38 = arith.addf %36, %37 : vector<8x128xf32>
    %c0_28 = arith.constant 0 : index
    %c0_29 = arith.constant 0 : index
    %39 = vector.load %arg3[%c0_28, %c0_29] : memref<8x128xf32, #tpu.memory_space<vmem>>, vector<8x128xf32>
    tpu.vector_store %arg3[%c0_28, %c0_29], %38 {strides = array<i32>} : memref<8x128xf32, #tpu.memory_space<vmem>>, vector<8x128xf32>,
    return
  }
}

</mosaic_0001>

<bundles_post_ra>
// kernel: forward.1
= control target key start
LH: loop header
LB: loop body
LE: loop exit
PB: predicated region body
PF: predicated region fallthrough
CT: control target
= control target key end

     0   :  { %8 = vsyncpa [#allocation3], 0  ;;  %s828_s0 = inlined_call_operand.vmem [shape: f32[8,128], index: 0, kind: input, shape index: {}]   ;;  %s829_s1 = inlined_call_operand.hbm [shape: bf16[4,128,128], index: 1, kind: input, shape index: {}]   ;;  %s830_s2 = inlined_call_operand.vmem [shape: f32[4,1,128], index: 2, kind: input, shape index: {}]   ;;  %s831_s3 = inlined_call_operand.hbm [shape: f32[8,128], index: 3, kind: output, shape index: {}]  }
   0x1   :  { %9 = vsyncpa [#allocation4], 0  ;;  %s741_s12 = smov [#allocation2]  }
   0x2   :  { %s17_s13 = sshll.u32 %s741_s12, 4  ;;  %s18_s13 = int_to_ptr.vmem [resolvable:$true] %s17_s13 }
   0x3   :  { %s705_s14 = scalar_lea.vmem %s18_s13, 4096  ;;  %p710_p1 = scmp.lt.s32.totalorder %s18_s13, %s18_s13 }
   0x4   :  { %p706_p0 = scmp.ne.s32.totalorder %s18_s13, %s705_s14  ;;  %p711_p2 = scmp.lt.s32.totalorder %s705_s14, %s705_s14 }
   0x6   :  { %p712_p3 = por %p711_p2, %p710_p1 }
   0x8   :  { %p713_p4 = pnand %p712_p3, %p706_p0 }
   0xa   :  { %716 = shalt.err (!%p713_p4)
}
   0xb   :  { %s742_s15 = smov 64   ;;  %s743_s16 = smov 4  }
   0xc   :  { %23 = dma.hbm_to_vmem [thread:$0]  %s829_s1, 4096, %s18_s13, [#allocation3], %s742_s15, %s742_s15, %s743_s16  }
   0xd   :  { %737 = dma.done.wait [#allocation3], 4096  }
   0xe   :  { %738 = vsyncadd [#allocation3], 4294963200  ;;  %v744_v0 = vmov 0.0   ;;  %vm745_vm0 = vmmov 0   ;;  %v665_v1 = vld [vmem:[#allocation2 + $0x38] sm:$0xff]   ;;  %v666_v2 = vld [vmem:[#allocation2 + $0x30] sm:$0xff]  }
   0xf   :  { %579 = vmatprep.subr.bf16.mxu0 %v744_v0  ;;  %595 = vmatprep.mubr.msk.bf16.mxu0 %vm745_vm0, %v744_v0  ;;  %v667_v3 = vld [vmem:[#allocation2 + $0x28] sm:$0xff]   ;;  %v673_v4 = vld [vmem:[#allocation2 + $0x78] sm:$0xff]   ;;  %v668_v5 = vld [vmem:[#allocation2 + $0x20] sm:$0xff]   ;;  %s746_s27 = smov [#allocation5]  }
  0x10   :  { %599 = vmatprep.subr.bf16.mxu1 %v744_v0  ;;  %615 = vmatprep.mubr.msk.bf16.mxu1 %vm745_vm0, %v744_v0  ;;  %v674_v6 = vld [vmem:[#allocation2 + $0x70] sm:$0xff]   ;;  %v669_v7 = vld [vmem:[#allocation2 + $0x18] sm:$0xff]   ;;  %v675_v8 = vld [vmem:[#allocation2 + $0x68] sm:$0xff]   ;;  %s495_s28 = sshll.u32 %s746_s27, 4  ;;  %s496_s28 = int_to_ptr.vmem [resolvable:$true] %s495_s28 }
  0x11   :  { %580 = vmatpush3.bf16.msra.mxu0 %v665_v1  ;;  %600 = vmatpush3.bf16.msra.mxu1 %v673_v4  ;;  %v670_v9 = vld [vmem:[#allocation2 + $0x10] sm:$0xff]   ;;  %v676_v10 = vld [vmem:[#allocation2 + $0x60] sm:$0xff]   ;;  %v671_v11 = vld [vmem:[#allocation2 + $0x8] sm:$0xff]   ;;  %s717_s29 = scalar_lea.vmem %s496_s28, 128  ;;  %p722_p6 = scmp.lt.s32.totalorder %s496_s28, %s496_s28 }
  0x12   :  { %581 = vmatprep.subr.bf16.mxu0 %v744_v0  ;;  %601 = vmatprep.subr.bf16.mxu1 %v744_v0  ;;  %v677_v12 = vld [vmem:[#allocation2 + $0x58] sm:$0xff]   ;;  %v672_v13 = vld [vmem:[#allocation2] sm:$0xff]   ;;  %v678_v15 = vld [vmem:[#allocation2 + $0x50] sm:$0xff]   ;;  %p718_p5 = scmp.ne.s32.totalorder %s496_s28, %s717_s29  ;;  %p723_p7 = scmp.lt.s32.totalorder %s717_s29, %s717_s29 }
  0x13   :  { %v30_v14 = vld [vmem:[%s828_s0] sm:$0xff]  ;;  %v679_v17 = vld [vmem:[#allocation2 + $0x48] sm:$0xff]   ;;  %v681_v19 = vld [vmem:[#allocation2 + $0xb8] sm:$0xff]  }
  0x14   :  { %v48_v16 = vpack.c.bf16 %v30_v14, %v30_v14  ;;  %v680_v18 = vld [vmem:[#allocation2 + $0x40] sm:$0xff]   ;;  %v682_v20 = vld [vmem:[#allocation2 + $0xb0] sm:$0xff]   ;;  %v683_v21 = vld [vmem:[#allocation2 + $0xa8] sm:$0xff]   ;;  %p724_p8 = por %p723_p7, %p722_p6 }
  0x15   :  { %582 = vmatpush3.bf16.msra.mxu0 %v666_v2  ;;  %602 = vmatpush3.bf16.msra.mxu1 %v674_v6  ;;  %v684_v22 = vld [vmem:[#allocation2 + $0xa0] sm:$0xff]   ;;  %v685_v23 = vld [vmem:[#allocation2 + $0x98] sm:$0xff]   ;;  %v686_v24 = vld [vmem:[#allocation2 + $0x90] sm:$0xff]  }
  0x16   :  { %583 = vmatprep.subr.bf16.mxu0 %v744_v0  ;;  %603 = vmatprep.subr.bf16.mxu1 %v744_v0  ;;  %v504_v25 = vld [vmem:[%s830_s2] ss:$0 sm:$0xff]  ;;  %v687_v33 = vld [vmem:[#allocation2 + $0x88] sm:$0xff]   ;;  %v689_v35 = vld [vmem:[#allocation2 + $0xf8] sm:$0xff]   ;;  %p725_p9 = pnand %p724_p8, %p718_p5 }
  0x17   :  { %v688_v34 = vld [vmem:[#allocation2 + $0x80] sm:$0xff]   ;;  %v690_v36 = vld [vmem:[#allocation2 + $0xf0] sm:$0xff]   ;;  %v691_v37 = vld [vmem:[#allocation2 + $0xe8] sm:$0xff]  }
  0x18   :  { %v692_v38 = vld [vmem:[#allocation2 + $0xe0] sm:$0xff]   ;;  %v693_v39 = vld [vmem:[#allocation2 + $0xd8] sm:$0xff]   ;;  %v694_v40 = vld [vmem:[#allocation2 + $0xd0] sm:$0xff]  }
  0x19   :  { %584 = vmatpush3.bf16.msra.mxu0 %v667_v3  ;;  %604 = vmatpush3.bf16.msra.mxu1 %v675_v8  ;;  %v514_v41 = vld [vmem:[%s830_s2 + $0x1] ss:$0 sm:$0xff]  ;;  %v695_v49 = vld [vmem:[#allocation2 + $0xc8] sm:$0xff]   ;;  %v524_v51 = vld [vmem:[%s830_s2 + $0x2] ss:$0 sm:$0xff] }
  0x1a   :  { %585 = vmatprep.subr.bf16.mxu0 %v744_v0  ;;  %605 = vmatprep.subr.bf16.mxu1 %v744_v0  ;;  %v696_v50 = vld [vmem:[#allocation2 + $0xc0] sm:$0xff]  }
  0x1b   :  { %v534_v59 = vld [vmem:[%s830_s2 + $0x3] ss:$0 sm:$0xff] }
  0x1d   :  { %586 = vmatpush3.bf16.msra.mxu0 %v668_v5  ;;  %606 = vmatpush3.bf16.msra.mxu1 %v676_v10 }
  0x1e   :  { %587 = vmatprep.subr.bf16.mxu0 %v744_v0  ;;  %607 = vmatprep.subr.bf16.mxu1 %v744_v0 }
  0x21   :  { %588 = vmatpush3.bf16.msra.mxu0 %v669_v7  ;;  %608 = vmatpush3.bf16.msra.mxu1 %v677_v12 }
  0x22   :  { %589 = vmatprep.subr.bf16.mxu0 %v744_v0  ;;  %609 = vmatprep.subr.bf16.mxu1 %v744_v0 }
  0x25   :  { %590 = vmatpush3.bf16.msra.mxu0 %v670_v9  ;;  %610 = vmatpush3.bf16.msra.mxu1 %v678_v15 }
  0x26   :  { %591 = vmatprep.subr.bf16.mxu0 %v744_v0  ;;  %611 = vmatprep.subr.bf16.mxu1 %v744_v0 }
  0x29   :  { %592 = vmatpush3.bf16.msra.mxu0 %v671_v11  ;;  %612 = vmatpush3.bf16.msra.mxu1 %v679_v17 }
  0x2a   :  { %593 = vmatprep.subr.bf16.mxu0 %v744_v0  ;;  %613 = vmatprep.subr.bf16.mxu1 %v744_v0 }
  0x2d   :  { %594 = vmatpush3.bf16.msra.mxu0 %v672_v13  ;;  %614 = vmatpush3.bf16.msra.mxu1 %v680_v18 }
  0x2e   :  { %619 = vmatprep.subr.bf16.mxu0 %v744_v0  ;;  %639 = vmatprep.subr.bf16.mxu1 %v744_v0 }
  0x30   :  { %596 = vmatmul.mubr.bf16.vlgmr.msra.gmra.mxu0 %v48_v16 }
  0x31   :  { %635 = vmatprep.mubr.msk.bf16.mxu0 %vm745_vm0, %v744_v0  ;;  %620 = vmatpush3.bf16.msra.mxu0 %v681_v19 }
  0x32   :  { %621 = vmatprep.subr.bf16.mxu0 %v744_v0 }
  0x35   :  { %622 = vmatpush3.bf16.msra.mxu0 %v682_v20 }
  0x36   :  { %623 = vmatprep.subr.bf16.mxu0 %v744_v0 }
  0x39   :  { %624 = vmatpush3.bf16.msra.mxu0 %v683_v21 }
  0x3a   :  { %625 = vmatprep.subr.bf16.mxu0 %v744_v0 }
  0x3d   :  { %626 = vmatpush3.bf16.msra.mxu0 %v684_v22 }
  0x3e   :  { %627 = vmatprep.subr.bf16.mxu0 %v744_v0 }
  0x41   :  { %628 = vmatpush3.bf16.msra.mxu0 %v685_v23 }
  0x42   :  { %629 = vmatprep.subr.bf16.mxu0 %v744_v0 }
  0x45   :  { %630 = vmatpush3.bf16.msra.mxu0 %v686_v24 }
  0x46   :  { %631 = vmatprep.subr.bf16.mxu0 %v744_v0 }
  0x49   :  { %632 = vmatpush3.bf16.msra.mxu0 %v687_v33 }
  0x4a   :  { %633 = vmatprep.subr.bf16.mxu0 %v744_v0 }
  0x4d   :  { %634 = vmatpush3.bf16.msra.mxu0 %v688_v34 }
  0xf0   :  { %v137_v26 = vpop.f32.mrf.mxu0 }
  0xf1   :  { %v138_v27 = vadd.f32 %v504_v25, %v137_v26 }
  0xf2   :  { %v597_v28 = vpop.f32.mrf.mxu0 }
  0xf3   :  { %v143_v29 = vmax.f32 %v138_v27, 0.0 }
  0xf4   :  { %v140_v30 = vpop.f32.mrf.mxu0 }
  0xf5   :  { %v163_v31 = vpack.c.bf16 %v143_v29, %v143_v29 }
  0xf6   :  { %v598_v32 = vpop.f32.mrf.mxu0 }
  0xf7   :  { %616 = vmatmul.mubr.bf16.vlgmr.msra.gmra.mxu1 %v163_v31 }
  0xf8   :  { %655 = vmatprep.mubr.msk.bf16.mxu1 %vm745_vm0, %v744_v0  ;;  %640 = vmatpush3.bf16.msra.mxu1 %v689_v35 }
  0xf9   :  { %641 = vmatprep.subr.bf16.mxu1 %v744_v0 }
  0xfc   :  { %642 = vmatpush3.bf16.msra.mxu1 %v690_v36 }
  0xfd   :  { %643 = vmatprep.subr.bf16.mxu1 %v744_v0 }
 0x100   :  { %644 = vmatpush3.bf16.msra.mxu1 %v691_v37 }
 0x101   :  { %645 = vmatprep.subr.bf16.mxu1 %v744_v0 }
 0x104   :  { %646 = vmatpush3.bf16.msra.mxu1 %v692_v38 }
 0x105   :  { %647 = vmatprep.subr.bf16.mxu1 %v744_v0 }
 0x108   :  { %648 = vmatpush3.bf16.msra.mxu1 %v693_v39 }
 0x109   :  { %649 = vmatprep.subr.bf16.mxu1 %v744_v0 }
 0x10c   :  { %650 = vmatpush3.bf16.msra.mxu1 %v694_v40 }
 0x10d   :  { %651 = vmatprep.subr.bf16.mxu1 %v744_v0 }
 0x110   :  { %652 = vmatpush3.bf16.msra.mxu1 %v695_v49 }
 0x111   :  { %653 = vmatprep.subr.bf16.mxu1 %v744_v0 }
 0x114   :  { %654 = vmatpush3.bf16.msra.mxu1 %v696_v50 }
 0x1b7   :  { %v252_v42 = vpop.f32.mrf.mxu1 }
 0x1b8   :  { %v253_v43 = vadd.f32 %v514_v41, %v252_v42 }
 0x1b9   :  { %v617_v44 = vpop.f32.mrf.mxu1 }
 0x1ba   :  { %v258_v45 = vmax.f32 %v253_v43, 0.0 }
 0x1bb   :  { %v255_v46 = vpop.f32.mrf.mxu1 }
 0x1bc   :  { %v278_v47 = vpack.c.bf16 %v258_v45, %v258_v45 }
 0x1bd   :  { %v618_v48 = vpop.f32.mrf.mxu1 }
 0x1be   :  { %636 = vmatmul.mubr.bf16.vlgmr.msra.gmra.mxu0 %v278_v47 }
 0x27e   :  { %v367_v52 = vpop.f32.mrf.mxu0 }
 0x27f   :  { %v368_v53 = vadd.f32 %v524_v51, %v367_v52 }
 0x280   :  { %v637_v54 = vpop.f32.mrf.mxu0 }
 0x281   :  { %v373_v55 = vmax.f32 %v368_v53, 0.0 }
 0x282   :  { %v370_v56 = vpop.f32.mrf.mxu0 }
 0x283   :  { %v393_v57 = vpack.c.bf16 %v373_v55, %v373_v55 }
 0x284   :  { %v638_v58 = vpop.f32.mrf.mxu0 }
 0x285   :  { %656 = vmatmul.mubr.bf16.vlgmr.msra.gmra.mxu1 %v393_v57 }
 0x345   :  { %v482_v60 = vpop.f32.mrf.mxu1 }
 0x346   :  { %v483_v61 = vadd.f32 %v534_v59, %v482_v60 }
 0x347   :  { %v657_v62 = vpop.f32.mrf.mxu1 }
 0x348   :  { %488 = vst [vmem:[#allocation5] sm:$0xff] %v483_v61 }
 0x349   :  { %v485_v63 = vpop.f32.mrf.mxu1 }
 0x34a   :  { %728 = shalt.err (!%p725_p9)
}
 0x34b   :  { %498 = dma.vmem_to_hbm [thread:$0]  %s496_s28, 128, %s831_s3, [#allocation4]   ;;  %v658_v0 = vpop.f32.mrf.mxu1 }
 0x34c   :  { %739 = dma.done.wait [#allocation4], 128  }
 0x34d   :  { %740 = vsyncadd [#allocation4], 4294967168 }
 0x34e   :  { %502 = vsyncpa [#allocation3], 1 }
 0x34f   :  { %503 = vsyncpa [#allocation4], 1 }

</bundles_post_ra>
